<compile_context>
chip_gen: v5e
topology: v5e:2x2
jax: 0.10.0
libtpu: 0.0.40
codegen_flags: <defaults>
</compile_context>

<pallas_src>
import jax
import jax.numpy as jnp
from jax.experimental import pallas as pl
from jax.experimental.pallas import tpu as pltpu


LANE = 128  # TPU lane width; hidden dim is padded to a multiple of this.


def _round_up(x, m):
    return ((x + m - 1) // m) * m


# -----------------------------------------------------------------------------
# Kernel: fused T-step GRU (batch=1) with in-kernel recurrence.
# -----------------------------------------------------------------------------
def gru_seq_kernel(tok_ref,     # SMEM (T,) int32  scalar-prefetch token ids
                   x_ref,       # (1, 1, Hp)  gathered embedding row (compute dtype)
                   h0_ref,      # (1, Hp)     initial hidden state, fp32
                   wih_ref,     # (Hp, 3Hp)   [W_ir^T | W_iz^T | W_in^T], compute dtype
                   whh_ref,     # (Hp, 3Hp)   [W_hr^T | W_hz^T | W_hn^T], compute dtype
                   bih_ref,     # (1, 3Hp)    fp32
                   bhh_ref,     # (1, 3Hp)    fp32
                   out_ref,     # (1, 1, Hp)  per-step output (== hidden), fp32
                   h_scr):      # VMEM scratch (1, Hp) fp32: carried hidden state
    del tok_ref  # token ids are only consumed by the index_maps
    t = pl.program_id(0)

    @pl.when(t == 0)
    def _():
        h_scr[...] = h0_ref[...]

    h = h_scr[...]                                   # (1, Hp) fp32
    x = x_ref[0]                                     # (1, Hp) compute dtype
    Hp = h.shape[-1]

    # Two wide matmuls (fp32 accumulation on the MXU) instead of six tiny ones.
    gi = jnp.dot(x, wih_ref[...], preferred_element_type=jnp.float32) + bih_ref[...]
    gh = jnp.dot(h.astype(whh_ref.dtype), whh_ref[...],
                 preferred_element_type=jnp.float32) + bhh_ref[...]

    i_r, i_z, i_n = gi[:, :Hp], gi[:, Hp:2 * Hp], gi[:, 2 * Hp:]
    h_r, h_z, h_n = gh[:, :Hp], gh[:, Hp:2 * Hp], gh[:, 2 * Hp:]

    # fp32 elementwise / EUP epilogue (safe on v5e: no bf16 VPU/EUP work).
    r = jax.nn.sigmoid(i_r + h_r)
    z = jax.nn.sigmoid(i_z + h_z)
    n = jnp.tanh(i_n + r * h_n)                      # b_hn correctly inside r*(.)
    h_new = (1.0 - z) * n + z * h

    h_scr[...] = h_new
    out_ref[...] = h_new[None].astype(out_ref.dtype)


# -----------------------------------------------------------------------------
# One-time parameter preparation (do NOT call per forward step).
# -----------------------------------------------------------------------------
def prepare_params(params, compute_dtype=jnp.bfloat16):
    emb = jnp.asarray(params["embedding"], jnp.float32)
    V, H = emb.shape
    Hp = _round_up(H, LANE)

    def stack_gates(w):                               # w: (3H, H), PyTorch layout
        wt = jnp.asarray(w, jnp.float32).T            # (H, 3H) = [Wr^T|Wz^T|Wn^T]
        gates = [wt[:, g * H:(g + 1) * H] for g in range(3)]
        gates = [jnp.pad(g, ((0, Hp - H), (0, Hp - H))) for g in gates]
        return jnp.concatenate(gates, axis=1).astype(compute_dtype)   # (Hp, 3Hp)

    def stack_bias(b):                                # (3H,)
        parts = [jnp.asarray(b[g * H:(g + 1) * H], jnp.float32) for g in range(3)]
        parts = [jnp.pad(p, (0, Hp - H)) for p in parts]
        return jnp.concatenate(parts).reshape(1, 3 * Hp)              # fp32

    emb_p = jnp.pad(emb, ((0, 0), (0, Hp - H))).reshape(V, 1, Hp).astype(compute_dtype)

    return {
        "H": H,
        "Hp": Hp,
        "emb": emb_p,                    # (V, 1, Hp)
        "w_ih": stack_gates(params["w_ih"]),
        "w_hh": stack_gates(params["w_hh"]),
        "b_ih": stack_bias(params["b_ih"]),
        "b_hh": stack_bias(params["b_hh"]),
    }


# -----------------------------------------------------------------------------
# Forward wrappers.
# -----------------------------------------------------------------------------
def encoder_rnn_forward_seq(tokens, hidden, prep):
    """Run EncoderRNN over a length-T token sequence in one pallas_call.

    tokens: (T,) int32; hidden: (1, 1, H) fp32.
    Returns (output (T, 1, H), hidden (1, 1, H)) — identical to threading the
    hidden state through T calls of EncoderRNN.forward.
    """
    H, Hp = prep["H"], prep["Hp"]
    tokens = jnp.asarray(tokens, jnp.int32).reshape(-1)
    T = tokens.shape[0]
    h0 = jnp.pad(hidden.reshape(1, H).astype(jnp.float32), ((0, 0), (0, Hp - H)))

    # Explicit VMEM budget (resident weights at large H; raises v5e's 16 MiB default).
    weight_bytes = (prep["w_ih"].size + prep["w_hh"].size) * prep["w_ih"].dtype.itemsize
    vmem_limit = int(max(4 * weight_bytes + (8 << 20), 32 << 20))
    # TODO(synk): for very large H on v7x, add pipeline_mode=pl.Buffered(1) on the
    # constant-index weight specs (they never change) to halve weight VMEM.

    out_p = pl.pallas_call(
        gru_seq_kernel,
        out_shape=jax.ShapeDtypeStruct((T, 1, Hp), jnp.float32),
        grid_spec=pltpu.PrefetchScalarGridSpec(
            num_scalar_prefetch=1,
            grid=(T,),
            in_specs=[
                # Embedding row gather via scalar-prefetched token ids (P2).
                pl.BlockSpec((1, 1, Hp), lambda t, tok: (tok[t], 0, 0)),
                pl.BlockSpec((1, Hp), lambda t, tok: (0, 0)),          # h0
                pl.BlockSpec((Hp, 3 * Hp), lambda t, tok: (0, 0)),     # W_ih (resident)
                pl.BlockSpec((Hp, 3 * Hp), lambda t, tok: (0, 0)),     # W_hh (resident)
                pl.BlockSpec((1, 3 * Hp), lambda t, tok: (0, 0)),      # b_ih
                pl.BlockSpec((1, 3 * Hp), lambda t, tok: (0, 0)),      # b_hh
            ],
            out_specs=pl.BlockSpec((1, 1, Hp), lambda t, tok: (t, 0, 0)),
            scratch_shapes=[pltpu.VMEM((1, Hp), jnp.float32)],
        ),
        compiler_params=pltpu.CompilerParams(
            dimension_semantics=("arbitrary",),   # recurrence: sequence axis is carried
            vmem_limit_bytes=vmem_limit,
        ),
    )(tokens, prep["emb"], h0, prep["w_ih"], prep["w_hh"], prep["b_ih"], prep["b_hh"])

    out = out_p[:, :, :H]                          # drop lane padding
    return out, out[-1:].reshape(1, 1, H)          # final hidden == last output


def encoder_rnn_forward(token, hidden, prep):
    """Mirrors EncoderRNN.forward(input, hidden): one token, one GRU step."""
    out, hid = encoder_rnn_forward_seq(
        jnp.asarray(token, jnp.int32).reshape(1), hidden, prep)
    return out.reshape(1, 1, prep["H"]), hid


# -----------------------------------------------------------------------------
# Synthetic parameters + pure-JAX references for validation.
# -----------------------------------------------------------------------------
def make_params(key, input_size, hidden_size):
    k0, k1, k2, k3, k4 = jax.random.split(key, 5)
    H = hidden_size
    bound = 1.0 / jnp.sqrt(jnp.float32(H))
    return {
        "embedding": jax.random.normal(k0, (input_size, H), jnp.float32),
        "w_ih": jax.random.uniform(k1, (3 * H, H), jnp.float32, -bound, bound),
        "w_hh": jax.random.uniform(k2, (3 * H, H), jnp.float32, -bound, bound),
        "b_ih": jax.random.uniform(k3, (3 * H,), jnp.float32, -bound, bound),
        "b_hh": jax.random.uniform(k4, (3 * H,), jnp.float32, -bound, bound),
    }


def encoder_rnn_reference(token, hidden, params):
    H = params["embedding"].shape[1]
    x = params["embedding"][jnp.asarray(token, jnp.int32)].reshape(1, H)
    h = hidden.reshape(1, H)
    gi = x @ params["w_ih"].T + params["b_ih"]
    gh = h @ params["w_hh"].T + params["b_hh"]
    i_r, i_z, i_n = gi[:, :H], gi[:, H:2 * H], gi[:, 2 * H:]
    h_r, h_z, h_n = gh[:, :H], gh[:, H:2 * H], gh[:, 2 * H:]
    r = jax.nn.sigmoid(i_r + h_r)
    z = jax.nn.sigmoid(i_z + h_z)
    n = jnp.tanh(i_n + r * h_n)
    h_new = (1.0 - z) * n + z * h
    return h_new.reshape(1, 1, H), h_new.reshape(1, 1, H)


def encoder_rnn_reference_seq(tokens, hidden, params):
    H = params["embedding"].shape[1]
    h = hidden
    outs = []
    for t in range(int(tokens.shape[0])):
        o, h = encoder_rnn_reference(tokens[t], h, params)
        outs.append(o.reshape(1, H))
    return jnp.stack(outs, axis=0), h


if __name__ == "__main__":
    input_size = 16     # vocabulary size
    hidden_size = 32
    seq_len = 8

    key = jax.random.PRNGKey(0)
    params = make_params(key, input_size, hidden_size)
    tokens = jax.random.randint(jax.random.PRNGKey(1), (seq_len,), 0, input_size,
                                dtype=jnp.int32)
    hidden0 = jnp.zeros((1, 1, hidden_size), jnp.float32)   # initHidden()

    out_ref, hid_ref = encoder_rnn_reference_seq(tokens, hidden0, params)

    # fp32-weight path: tight numerical check against the pure-JAX reference.
    prep_f32 = prepare_params(params, jnp.float32)
    out32, hid32 = encoder_rnn_forward_seq(tokens, hidden0, prep_f32)
    out32 = jax.block_until_ready(out32)
    hid32 = jax.block_until_ready(hid32)
    assert out32.shape == (seq_len, 1, hidden_size)
    assert hid32.shape == (1, 1, hidden_size)
    assert jnp.allclose(out32, out_ref, atol=1e-5, rtol=1e-5)
    assert jnp.allclose(hid32, hid_ref, atol=1e-5, rtol=1e-5)

    # bf16-weight path (recommended fast path): halves weight DMA / VMEM.
    prep_bf16 = prepare_params(params, jnp.bfloat16)
    out16, hid16 = encoder_rnn_forward_seq(tokens, hidden0, prep_bf16)
    out16 = jax.block_until_ready(out16)
    assert jnp.allclose(out16, out_ref, atol=3e-2, rtol=3e-2)

    # Single-step API, exactly EncoderRNN.forward(input, hidden).
    out1, hid1 = encoder_rnn_forward(tokens[0], hidden0, prep_f32)
    out1 = jax.block_until_ready(out1)
    out1_ref, hid1_ref = encoder_rnn_reference(tokens[0], hidden0, params)
    assert out1.shape == (1, 1, hidden_size) and hid1.shape == (1, 1, hidden_size)
    assert jnp.allclose(out1, out1_ref, atol=1e-5, rtol=1e-5)
    assert jnp.allclose(hid1, hid1_ref, atol=1e-5, rtol=1e-5)

    print("KERNEL_OK")
</pallas_src>

<mosaic_0001>
module attributes {stable_mosaic.version = 11 : i64} {
  func.func @gru_seq_kernel(%arg0: i32, %arg1: memref<8xi32, #tpu.memory_space<smem>>, %arg2: memref<1x1x128xf32, #tpu.memory_space<vmem>>, %arg3: memref<1x128xf32, #tpu.memory_space<vmem>>, %arg4: memref<128x384xf32, #tpu.memory_space<vmem>>, %arg5: memref<128x384xf32, #tpu.memory_space<vmem>>, %arg6: memref<1x384xf32, #tpu.memory_space<vmem>>, %arg7: memref<1x384xf32, #tpu.memory_space<vmem>>, %arg8: memref<1x1x128xf32, #tpu.memory_space<vmem>>, %arg9: memref<1x128xf32, #tpu.memory_space<vmem>>) attributes {dimension_semantics = [#tpu.dimension_semantics<arbitrary>], iteration_bounds = array<i64: 8>, scalar_prefetch = 1 : i64, scratch_operands = 1 : i64, tpu.core_type = #tpu.core_type<tc>, window_params = [{transform_indices = @transform_0, window_bounds = array<i64: 1, 1, 128>}, {pipeline_mode = #tpu.pipeline_mode<synchronous>, transform_indices = @transform_1, window_bounds = array<i64: 1, 128>}, {pipeline_mode = #tpu.pipeline_mode<synchronous>, transform_indices = @transform_2, window_bounds = array<i64: 128, 384>}, {pipeline_mode = #tpu.pipeline_mode<synchronous>, transform_indices = @transform_3, window_bounds = array<i64: 128, 384>}, {pipeline_mode = #tpu.pipeline_mode<synchronous>, transform_indices = @transform_4, window_bounds = array<i64: 1, 384>}, {pipeline_mode = #tpu.pipeline_mode<synchronous>, transform_indices = @transform_5, window_bounds = array<i64: 1, 384>}, {transform_indices = @transform_6, window_bounds = array<i64: 1, 1, 128>}]} {
    %c0_i32 = arith.constant 0 : i32
    %0 = arith.cmpi eq, %arg0, %c0_i32 : i32
    %1 = arith.extui %0 : i1 to i32
    %c0_i32_0 = arith.constant 0 : i32
    %2 = arith.cmpi ne, %1, %c0_i32_0 : i32
    scf.if %2 {
      %c0_22 = arith.constant 0 : index
      %c0_23 = arith.constant 0 : index
      %43 = vector.load %arg3[%c0_22, %c0_23] : memref<1x128xf32, #tpu.memory_space<vmem>>, vector<1x128xf32>
      %c0_24 = arith.constant 0 : index
      %c0_25 = arith.constant 0 : index
      %44 = vector.load %arg9[%c0_24, %c0_25] : memref<1x128xf32, #tpu.memory_space<vmem>>, vector<1x128xf32>
      tpu.vector_store %arg9[%c0_24, %c0_25], %43 {strides = array<i32>} : memref<1x128xf32, #tpu.memory_space<vmem>>, vector<1x128xf32>,
    } else {
    }
    %c0 = arith.constant 0 : index
    %c0_1 = arith.constant 0 : index
    %3 = vector.load %arg9[%c0, %c0_1] : memref<1x128xf32, #tpu.memory_space<vmem>>, vector<1x128xf32>
    %c0_2 = arith.constant 0 : index
    %c0_3 = arith.constant 0 : index
    %c0_4 = arith.constant 0 : index
    %4 = vector.load %arg2[%c0_2, %c0_3, %c0_4] : memref<1x1x128xf32, #tpu.memory_space<vmem>>, vector<1x1x128xf32>
    %5 = vector.shape_cast %4 : vector<1x1x128xf32> to vector<1x128xf32>
    %c0_5 = arith.constant 0 : index
    %c0_6 = arith.constant 0 : index
    %6 = vector.load %arg4[%c0_5, %c0_6] : memref<128x384xf32, #tpu.memory_space<vmem>>, vector<128x384xf32>
    %cst = arith.constant dense<0.000000e+00> : vector<1x384xf32>
    %7 = tpu.matmul %5, %6, %cst {dimension_numbers = #tpu.dot_dimension_numbers<[1], [0], [0], [1], [0, 0, 1, 1], [], []>} : vector<1x128xf32>, vector<128x384xf32>, vector<1x384xf32> -> vector<1x384xf32>
    %c0_7 = arith.constant 0 : index
    %c0_8 = arith.constant 0 : index
    %8 = vector.load %arg6[%c0_7, %c0_8] : memref<1x384xf32, #tpu.memory_space<vmem>>, vector<1x384xf32>
    %9 = arith.addf %7, %8 : vector<1x384xf32>
    %c0_9 = arith.constant 0 : index
    %c0_10 = arith.constant 0 : index
    %10 = vector.load %arg5[%c0_9, %c0_10] : memref<128x384xf32, #tpu.memory_space<vmem>>, vector<128x384xf32>
    %cst_11 = arith.constant dense<0.000000e+00> : vector<1x384xf32>
    %11 = tpu.matmul %3, %10, %cst_11 {dimension_numbers = #tpu.dot_dimension_numbers<[1], [0], [0], [1], [0, 0, 1, 1], [], []>} : vector<1x128xf32>, vector<128x384xf32>, vector<1x384xf32> -> vector<1x384xf32>
    %c0_12 = arith.constant 0 : index
    %c0_13 = arith.constant 0 : index
    %12 = vector.load %arg7[%c0_12, %c0_13] : memref<1x384xf32, #tpu.memory_space<vmem>>, vector<1x384xf32>
    %13 = arith.addf %11, %12 : vector<1x384xf32>
    %14 = vector.extract_strided_slice %9 {offsets = [0, 0], sizes = [1, 128], strides = [1, 1]} : vector<1x384xf32> to vector<1x128xf32>
    %15 = vector.extract_strided_slice %9 {offsets = [0, 128], sizes = [1, 128], strides = [1, 1]} : vector<1x384xf32> to vector<1x128xf32>
    %16 = vector.extract_strided_slice %9 {offsets = [0, 256], sizes = [1, 128], strides = [1, 1]} : vector<1x384xf32> to vector<1x128xf32>
    %17 = vector.extract_strided_slice %13 {offsets = [0, 0], sizes = [1, 128], strides = [1, 1]} : vector<1x384xf32> to vector<1x128xf32>
    %18 = vector.extract_strided_slice %13 {offsets = [0, 128], sizes = [1, 128], strides = [1, 1]} : vector<1x384xf32> to vector<1x128xf32>
    %19 = vector.extract_strided_slice %13 {offsets = [0, 256], sizes = [1, 128], strides = [1, 1]} : vector<1x384xf32> to vector<1x128xf32>
    %20 = arith.addf %14, %17 : vector<1x128xf32>
    %21 = arith.negf %20 : vector<1x128xf32>
    %22 = math.exp %21 : vector<1x128xf32>
    %cst_14 = arith.constant 1.000000e+00 : f32
    %23 = vector.broadcast %cst_14 : f32 to vector<1x128xf32>
    %24 = arith.addf %23, %22 : vector<1x128xf32>
    %25 = arith.divf %23, %24 : vector<1x128xf32>
    %26 = arith.addf %15, %18 : vector<1x128xf32>
    %27 = arith.negf %26 : vector<1x128xf32>
    %28 = math.exp %27 : vector<1x128xf32>
    %cst_15 = arith.constant 1.000000e+00 : f32
    %29 = vector.broadcast %cst_15 : f32 to vector<1x128xf32>
    %30 = arith.addf %29, %28 : vector<1x128xf32>
    %31 = arith.divf %29, %30 : vector<1x128xf32>
    %32 = arith.mulf %25, %19 : vector<1x128xf32>
    %33 = arith.addf %16, %32 : vector<1x128xf32>
    %34 = math.tanh %33 : vector<1x128xf32>
    %cst_16 = arith.constant 1.000000e+00 : f32
    %35 = vector.broadcast %cst_16 : f32 to vector<1x128xf32>
    %36 = arith.subf %35, %31 : vector<1x128xf32>
    %37 = arith.mulf %36, %34 : vector<1x128xf32>
    %38 = arith.mulf %31, %3 : vector<1x128xf32>
    %39 = arith.addf %37, %38 : vector<1x128xf32>
    %c0_17 = arith.constant 0 : index
    %c0_18 = arith.constant 0 : index
    %40 = vector.load %arg9[%c0_17, %c0_18] : memref<1x128xf32, #tpu.memory_space<vmem>>, vector<1x128xf32>
    tpu.vector_store %arg9[%c0_17, %c0_18], %39 {strides = array<i32>} : memref<1x128xf32, #tpu.memory_space<vmem>>, vector<1x128xf32>,
    %41 = vector.shape_cast %39 : vector<1x128xf32> to vector<1x1x128xf32>
    %c0_19 = arith.constant 0 : index
    %c0_20 = arith.constant 0 : index
    %c0_21 = arith.constant 0 : index
    %42 = vector.load %arg8[%c0_19, %c0_20, %c0_21] : memref<1x1x128xf32, #tpu.memory_space<vmem>>, vector<1x1x128xf32>
    tpu.vector_store %arg8[%c0_19, %c0_20, %c0_21], %41 {strides = array<i32>} : memref<1x1x128xf32, #tpu.memory_space<vmem>>, vector<1x1x128xf32>,
    return
  }
  func.func @transform_0(%arg0: i32, %arg1: memref<8xi32, #tpu.memory_space<smem>>) -> (i32, i32, i32) {
    %0 = arith.index_cast %arg0 : i32 to index
    %1 = memref.load %arg1[%0] : memref<8xi32, #tpu.memory_space<smem>>
    %c0_i32 = arith.constant 0 : i32
    %c0_i32_0 = arith.constant 0 : i32
    %c0_i32_1 = arith.constant 0 : i32
    return %1, %c0_i32, %c0_i32_0 : i32, i32, i32
  }
  func.func @transform_1(%arg0: i32, %arg1: memref<8xi32, #tpu.memory_space<smem>>) -> (i32, i32) {
    %c0_i32 = arith.constant 0 : i32
    %c0_i32_0 = arith.constant 0 : i32
    %c0_i32_1 = arith.constant 0 : i32
    return %c0_i32, %c0_i32_0 : i32, i32
  }
  func.func @transform_2(%arg0: i32, %arg1: memref<8xi32, #tpu.memory_space<smem>>) -> (i32, i32) {
    %c0_i32 = arith.constant 0 : i32
    %c0_i32_0 = arith.constant 0 : i32
    %c0_i32_1 = arith.constant 0 : i32
    return %c0_i32, %c0_i32_0 : i32, i32
  }
  func.func @transform_3(%arg0: i32, %arg1: memref<8xi32, #tpu.memory_space<smem>>) -> (i32, i32) {
    %c0_i32 = arith.constant 0 : i32
    %c0_i32_0 = arith.constant 0 : i32
    %c0_i32_1 = arith.constant 0 : i32
    return %c0_i32, %c0_i32_0 : i32, i32
  }
  func.func @transform_4(%arg0: i32, %arg1: memref<8xi32, #tpu.memory_space<smem>>) -> (i32, i32) {
    %c0_i32 = arith.constant 0 : i32
    %c0_i32_0 = arith.constant 0 : i32
    %c0_i32_1 = arith.constant 0 : i32
    return %c0_i32, %c0_i32_0 : i32, i32
  }
  func.func @transform_5(%arg0: i32, %arg1: memref<8xi32, #tpu.memory_space<smem>>) -> (i32, i32) {
    %c0_i32 = arith.constant 0 : i32
    %c0_i32_0 = arith.constant 0 : i32
    %c0_i32_1 = arith.constant 0 : i32
    return %c0_i32, %c0_i32_0 : i32, i32
  }
  func.func @transform_6(%arg0: i32, %arg1: memref<8xi32, #tpu.memory_space<smem>>) -> (i32, i32, i32) {
    %c0_i32 = arith.constant 0 : i32
    %c0_i32_0 = arith.constant 0 : i32
    %c0_i32_1 = arith.constant 0 : i32
    return %arg0, %c0_i32, %c0_i32_0 : i32, i32, i32
  }
}

</mosaic_0001>

<bundles_post_ra>
// kernel: tpu_custom_call.1
= control target key start
LH: loop header
LB: loop body
LE: loop exit
PB: predicated region body
PF: predicated region fallthrough
CT: control target
= control target key end

     0   :  { %s1085_s27 = smov [#allocation4]   ;;  %s1349_s0 = inlined_call_operand.hbm [shape: s32[8], index: 0, kind: input, shape index: {}]   ;;  %s1350_s1 = inlined_call_operand.hbm [shape: f32[16,1,128], index: 1, kind: input, shape index: {}]   ;;  %s1351_s2 = inlined_call_operand.vmem [shape: f32[1,128], index: 2, kind: input, shape index: {}]   ;;  %s1352_s3 = inlined_call_operand.hbm [shape: f32[128,384], index: 3, kind: input, shape index: {}]   ;;  %s1353_s4 = inlined_call_operand.hbm [shape: f32[128,384], index: 4, kind: input, shape index: {}]   ;;  %s1354_s5 = inlined_call_operand.vmem [shape: f32[1,384], index: 5, kind: input, shape index: {}]   ;;  %s1355_s6 = inlined_call_operand.hbm [shape: f32[1,384], index: 6, kind: input, shape index: {}]   ;;  %s1356_s7 = inlined_call_operand.hbm [shape: f32[8,1,128], index: 7, kind: output, shape index: {}]  }
   0x1   :  { %1358 = sst [smem:[#allocation24_spill]] %s1352_s3  ;;  %s13_s26 = sshll.u32 %s1349_s0, 4  ;;  %s14_s26 = int_to_ptr.hbm [resolvable:$true] %s13_s26 }
   0x2   :  { %1359 = sst [smem:[#allocation25_spill]] %s1353_s4 }
   0x3   :  { %1360 = sst [smem:[#allocation26_spill]] %s1355_s6 }
   0x4   :  { %16 = dma.hbm_to_smem %s14_s26, 16, %s1085_s27, [#allocation3] }
   0x5   :  { %1039 = dma.done.wait [#allocation3], 16 }
   0x6   :  { %1040 = vsyncadd [#allocation3], 4294967280 }
   0x7   :  { %19 = sfence }
   0x8   :  { %20 = vsyncpa [#allocation6], 0 }
   0x9   :  { %22 = vsyncpa [#allocation6 + $0x1], 0 }
   0xa   :  { %23 = vsyncpa [#allocation9], 0 }
   0xb   :  { %24 = vsyncpa [#allocation12], 0 }
   0xc   :  { %25 = vsyncpa [#allocation7], 0 }
   0xd   :  { %27 = vsyncpa [#allocation7 + $0x1], 0  ;;  %s1134_s28 = smov 0   ;;  %s1136_s29 = smov 0  }
   0xe   :  { %s1138_s30 = smov 0   ;;  %s1140_s8 = smov 0  }
   0xf   :  { %s1142_s0 = smov 0   ;;  %s1144_s9 = smov 0  }
  0x10   :  { %s1146_s10 = smov 0  }
  0x11 LB: > { %1361 = sst [smem:[#allocation21_spill]] %s1079_s9  ;;  %s1170_s11 = sadd.s32 4294967295, %s1083_s10   ;;  %s1083_s10 = sphi %s1146_s10, %s1382_s10   ;;  %s1079_s9 = sphi %s1144_s9, %s1376_s9   ;;  %s1075_s0 = sphi %s1142_s0, %s1381_s0   ;;  %s1071_s8 = sphi %s1140_s8, %s1380_s8   ;;  %s1067_s30 = sphi %s1138_s30, %s1379_s30   ;;  %s1063_s29 = sphi %s1136_s29, %s1378_s29   ;;  %s1059_s28 = sphi %s1134_s28, %s1377_s28  }
  0x12   : > { %s718_s12 = sadd.s32 4294967294, %s1083_s10   ;;  %p56_p0 = scmp.eq.s32.totalorder %s1170_s11, 0 }
  0x13   : > { %p183_p1 = scmp.ne.s32.totalorder %s1067_s30, %s1063_s29  ;;  %p184_p2 = scmp.eq.s32.totalorder %s1170_s11, 7 }
  0x14   : > { %p189_p3 = scmp.ne.s32.totalorder %s1063_s29, %s1059_s28  ;;  %p190_p4 = scmp.eq.s32.totalorder %s718_s12, 7 }
  0x15   : > { %p1179_p5 = por %p184_p2, %p183_p1  ;;  %p719_p6 = scmp.ge.s32.totalorder %s1083_s10, 1 }
  0x16   : > { %p1184_p7 = por %p190_p4, %p189_p3  ;;  %p197_p8 = scmp.lt.s32.totalorder %s1083_s10, 9 }
  0x17   : > { %s1364_s3 = sld [smem:[#allocation24_spill]]  ;;  %s1086_s19 = smov [#allocation8]  }
  0x18   : > { %p1193_p10 = pnand %p719_p6, %p197_p8  ;;  %s213_s20 = sshll.u32 %s1086_s19, 4  ;;  %s214_s20 = int_to_ptr.vmem [resolvable:$true] %s213_s20 }
  0x19   : > { %s1367_s4 = sld [smem:[#allocation25_spill]]  ;;  %s1087_s25 = smov 384  }
  0x1a   : > { %p751_p11 = pneg %p1193_p10  ;;  %s1088_s26 = smov 24  }
  0x1b   : > { %s1089_s27 = smov [#allocation10]   ;;  %s1368_s6 = sld [smem:[#allocation26_spill]] }
  0x1c   : > { %p1201_p12 = pnand %p751_p11, %p56_p0  ;;  %s227_s12 = sshll.u32 %s1089_s27, 4  ;;  %s228_s12 = int_to_ptr.vmem [resolvable:$true] %s227_s12 }
  0x1d   : > { %s211_s17 = sshll.u32 %s1364_s3, 4  ;;  %s1090_s22 = smov [#allocation11]   ;;  %s212_s17 = int_to_ptr.hbm [resolvable:$true] %s211_s17 }
  0x1e   : > { %754 = dma.hbm_to_vmem [thread:$0]  (!%p1201_p12), %s212_s17, 6144, %s214_s20, [#allocation9], %s1087_s25, %s1087_s25, %s1088_s26  }
  0x1f   : > { %s225_s24 = sshll.u32 %s1367_s4, 4  ;;  %s245_s23 = sshll.u32 %s1090_s22, 4  ;;  %s226_s24 = int_to_ptr.hbm [resolvable:$true] %s225_s24  ;;  %s246_s23 = int_to_ptr.vmem [resolvable:$true] %s245_s23 }
  0x20   : > { %757 = dma.hbm_to_vmem [thread:$0]  (!%p1201_p12), %s226_s24, 6144, %s228_s12, [#allocation9], %s1087_s25, %s1087_s25, %s1088_s26  }
  0x21   : > { %s243_s19 = sshll.u32 %s1368_s6, 4  ;;  %s1218_s17 = sadd.s32 1, %s1083_s10   ;;  %s244_s19 = int_to_ptr.hbm [resolvable:$true] %s243_s19 }
  0x22   : > { %760 = dma.hbm_to_vmem [thread:$0]  (!%p1201_p12), %s244_s19, 48, %s246_s23, [#allocation12]  }
  0x23   : > { %s37_s20 = sld [smem:[#allocation4 + %s1083_s10]]  ;;  %p49_p13 = scmp.ne.s32.totalorder %s1079_s9, %s1075_s0 }
  0x24   : > { %s38_s27 = sld [smem:[#allocation4 + %s1218_s17]]  ;;  %p55_p1 = scmp.ne.s32.totalorder %s1075_s0, %s1071_s8 }
  0x25   : > { %p50_p2 = scmp.eq.s32.totalorder %s1083_s10, 0  ;;  %s170_s24 = ssub.s32 %s1083_s10, %s1218_s17 }
  0x26   : > { %p1231_p3 = por %p56_p0, %p55_p1  ;;  %s173_s21 = sadd.s32 1, %s1067_s30 }
  0x27   : > { %p171_p4 = scmp.eq.s32.totalorder %s170_s24, 0  ;;  %s42_s26 = sadd.s32 1, %s1079_s9 }
  0x28   : > { %p774_p6 = scmp.lt.s32.totalorder %s1083_s10, 8  ;;  %p51_p8 = por %p50_p2, %p49_p13 }
  0x29   : > { %s256_s15 = sand.u32 1, %s1079_s9  }
  0x2a   : > { %s39_s12 = ssub.s32 %s37_s20, %s38_s27  ;;  %p1246_p12 = pnand %p774_p6, %p51_p8 }
  0x2b   : > { %p40_p11 = scmp.eq.s32.totalorder %s39_s12, 0  ;;  %s259_s3 = scalar_lea.vmem [#allocation5], %s256_s15 }
  0x2c   : > { %s1240_s16 = scalar_select %p171_p4, %s1067_s30, %s173_s21  }
  0x2d   : > { %s1243_s19 = scalar_select %p40_p11, %s1079_s9, %s42_s26  }
  0x2e   : > { %1370 = sst [smem:[#allocation22_spill]] %s1240_s16  ;;  %s267_s4 = sshll.u32 %s259_s3, 4  ;;  %s268_s4 = int_to_ptr.vmem [resolvable:$true] %s267_s4 }
  0x2f   : > { %1371 = sst [smem:[#allocation23_spill]] %s1243_s19  ;;  %s257_s26 = scalar_lea.sflag [#allocation6], %s256_s15 }
  0x30   : > { %s739_s8 = scalar_select %p51_p8, [#allocation4], [#allocation14] }
  0x31   : > { %s740_s22 = scalar_select %p51_p8, %s1083_s10, 0 }
  0x32   : > { %s1384_s8 = smov (!%p774_p6, %s739_s8), [#allocation15]  ;;  %p957_p1 = pneg %p1246_p12 }
  0x33   : > { %s1386_s22 = smov (!%p774_p6, %s740_s22), 0  ;;  %s960_s3 = scalar_lea.hbm %s1350_s1, 16 }
  0x34   : > { %s260_s24 = sld [smem:[%s1384_s8 + %s1386_s22]] }
  0x3a   : > { %s263_s12 = scalar_lea.hbm %s1350_s1, %s260_s24 }
  0x3b   : > { %s265_s21 = sshll.u32 %s263_s12, 4  ;;  %s266_s21 = int_to_ptr.hbm [resolvable:$true] %s265_s21 }
  0x3c   : > { %s953_s6 = sshra.s32 %s266_s21, 4  ;;  %s954_s6 = int_to_ptr.hbm [resolvable:$true] %s953_s6 }
  0x3d   : > { %s955_s19 = scalar_lea.hbm %s954_s6, 1  ;;  %p961_p6 = scmp.lt.s32.totalorder %s954_s6, %s1350_s1 }
  0x3e   : > { %p956_p13 = scmp.ne.s32.totalorder %s954_s6, %s955_s19  ;;  %p962_p8 = scmp.lt.s32.totalorder %s960_s3, %s955_s19 }
  0x40   : > { %p958_p2 = pnand %p957_p1, %p956_p13  ;;  %p963_p11 = por %p962_p8, %p961_p6 }
  0x42   : > { %p959_p4 = pneg %p958_p2 }
  0x44   : > { %p964_p9 = pnand %p963_p11, %p959_p4 }
  0x46   : > { %967 = shalt.err (!%p964_p9)
}
  0x47   : > { %766 = dma.hbm_to_vmem [thread:$0]  (!%p1246_p12), %s266_s21, 16, %s268_s4, %s257_s26  }
  0x48   : > { %276 = sbr.rel (%p1193_p10) target bundleno = 323 (0x143), region = 44  ;;  %s278_s15 = sand.u32 (!%p1193_p10), 1, %s1075_s0  }
  0x49   : > { %s279_s24 = scalar_lea.sflag (!%p1193_p10), [#allocation6], %s278_s15  ;;  %s1266_s9 = scalar_lea.vmem (!%p1193_p10), [#allocation5], %s278_s15 }
  0x4d   : > { %1042 = dma.done.wait (%p1231_p3), %s279_s24, 16  }
  0x4e   : > { %1044 = vsyncadd (%p1231_p3), %s279_s24, 4294967280 }
  0x4f   : > { %1046 = dma.done.wait (%p56_p0), [#allocation9], 12288  }
  0x50   : > { %1048 = vsyncadd (%p56_p0), [#allocation9], 4294955008 }
  0x51   : > { %1050 = dma.done.wait (%p56_p0), [#allocation12], 48  }
  0x52   : > { %1052 = vsyncadd (%p56_p0), [#allocation12], 4294967248  ;;  %s322_s4 = sand.u32 1, %s1063_s29   ;;  %p1373_p9 = scmp.ne.s32.totalorder %s1170_s11, 0 }
  0x53   : > { %s1283_s6 = scalar_lea.vmem [#allocation13], %s322_s4 }
  0x54   : > { %328 = sbr.rel (%p1373_p9) target bundleno = 91 (0x5b), region = 64 }
  0x59   : > { %v329_v0 = vld [vmem:[%s1351_s2] sm:$0x1] }
  0x5a   : > { %330 = vst [vmem:[#allocation2] sm:$0x1] %v329_v0 }
  0x5b PF: > { %v378_v1 = vld [vmem:[#allocation8 + $0x168] sm:$0xff]  ;;  %v375_v2 = vld [vmem:[#allocation8 + $0x150] sm:$0xff]  ;;  %v372_v5 = vld [vmem:[#allocation8 + $0x138] sm:$0xff]  ;;  %s623_s27 = scalar_lea.hbm %s1356_s7, %s1170_s11  ;;  %s625_s12 = sshll.u32 %s1283_s6, 4  ;;  %s626_s12 = int_to_ptr.vmem [resolvable:$true] %s625_s12 }
  0x5c   : > { %v494_v3 = vld [vmem:[#allocation10 + $0x168] sm:$0xff]  ;;  %389 = vmatpush.msra.mxu0 %v378_v1  ;;  %v491_v4 = vld [vmem:[#allocation10 + $0x150] sm:$0xff]  ;;  %v488_v6 = vld [vmem:[#allocation10 + $0x138] sm:$0xff]  ;;  %s627_s21 = sshll.u32 %s623_s27, 4  ;;  %s615_s26 = scalar_lea.sflag [#allocation7], %s322_s4  ;;  %s628_s21 = int_to_ptr.hbm [resolvable:$true] %s627_s21 }
  0x5d   : > { %505 = vmatpush.msra.mxu3 %v494_v3  ;;  %v379_v7 = vld [vmem:[#allocation8 + $0x170] sm:$0xff]  ;;  %v376_v8 = vld [vmem:[#allocation8 + $0x158] sm:$0xff]  ;;  %v369_v9 = vld [vmem:[#allocation8 + $0x120] sm:$0xff]  ;;  %s997_s8 = sshra.s32 %s628_s21, 4  ;;  %s1003_s15 = scalar_lea.hbm %s1356_s7, 8  ;;  %s998_s8 = int_to_ptr.hbm [resolvable:$true] %s997_s8 }
  0x5e   : > { %390 = vmatpush.msra.mxu0 %v375_v2  ;;  %409 = vmatpush.msra.mxu1 %v379_v7  ;;  %v485_v10 = vld [vmem:[#allocation10 + $0x120] sm:$0xff]  ;;  %v366_v12 = vld [vmem:[#allocation8 + $0x108] sm:$0xff]  ;;  %v363_v15 = vld [vmem:[#allocation8 + $0xf0] sm:$0xff]  ;;  %s999_s3 = scalar_lea.hbm %s998_s8, 1  ;;  %p1004_p12 = scmp.lt.s32.totalorder %s998_s8, %s1356_s7 }
  0x5f   : > { %506 = vmatpush.msra.mxu3 %v491_v4  ;;  %v373_v11 = vld [vmem:[#allocation8 + $0x140] sm:$0xff]  ;;  %v482_v13 = vld [vmem:[#allocation10 + $0x108] sm:$0xff]  ;;  %v479_v16 = vld [vmem:[#allocation10 + $0xf0] sm:$0xff]  ;;  %p1000_p0 = scmp.ne.s32.totalorder %s998_s8, %s999_s3  ;;  %p1005_p13 = scmp.lt.s32.totalorder %s1003_s15, %s999_s3 }
  0x60   : > { %391 = vmatpush.msra.mxu0 %v372_v5  ;;  %410 = vmatpush.msra.mxu1 %v376_v8  ;;  %v370_v14 = vld [vmem:[#allocation8 + $0x128] sm:$0xff]  ;;  %v367_v17 = vld [vmem:[#allocation8 + $0x110] sm:$0xff]  ;;  %v360_v18 = vld [vmem:[#allocation8 + $0xd8] sm:$0xff] }
  0x61   : > { %507 = vmatpush.msra.mxu3 %v488_v6  ;;  %v476_v19 = vld [vmem:[#allocation10 + $0xd8] sm:$0xff]  ;;  %v357_v21 = vld [vmem:[#allocation8 + $0xc0] sm:$0xff]  ;;  %v354_v24 = vld [vmem:[#allocation8 + $0xa8] sm:$0xff]  ;;  %p1001_p10 = pnand %p1000_p0, %p1179_p5  ;;  %p1006_p1 = por %p1005_p13, %p1004_p12 }
  0x62   : > { %392 = vmatpush.msra.mxu0 %v369_v9  ;;  %411 = vmatpush.msra.mxu1 %v373_v11  ;;  %v364_v20 = vld [vmem:[#allocation8 + $0xf8] sm:$0xff]  ;;  %v473_v22 = vld [vmem:[#allocation10 + $0xc0] sm:$0xff]  ;;  %v470_v25 = vld [vmem:[#allocation10 + $0xa8] sm:$0xff] }
  0x63   : > { %508 = vmatpush.msra.mxu3 %v485_v10  ;;  %v361_v23 = vld [vmem:[#allocation8 + $0xe0] sm:$0xff]  ;;  %v358_v26 = vld [vmem:[#allocation8 + $0xc8] sm:$0xff]  ;;  %v351_v27 = vld [vmem:[#allocation8 + $0x90] sm:$0xff]  ;;  %p1002_p3 = pneg %p1001_p10 }
  0x64   : > { %393 = vmatpush.msra.mxu0 %v366_v12  ;;  %412 = vmatpush.msra.mxu1 %v370_v14  ;;  %v467_v28 = vld [vmem:[#allocation10 + $0x90] sm:$0xff]  ;;  %v380_v29 = vld [vmem:[#allocation8 + $0x178] sm:$0xff]  ;;  %v377_v31 = vld [vmem:[#allocation8 + $0x160] sm:$0xff] }
  0x65   : > { %509 = vmatpush.msra.mxu3 %v482_v13  ;;  %v355_v30 = vld [vmem:[#allocation8 + $0xb0] sm:$0xff]  ;;  %v348_v32 = vld [vmem:[#allocation8 + $0x78] sm:$0xff]  ;;  %429 = vmatpush.msra.mxu2 %v380_v29  ;;  %v374_v35 = vld [vmem:[#allocation8 + $0x148] sm:$0xff]  ;;  %p1007_p2 = pnand %p1006_p1, %p1002_p3 }
  0x66   : > { %394 = vmatpush.msra.mxu0 %v363_v15  ;;  %413 = vmatpush.msra.mxu1 %v367_v17  ;;  %v464_v33 = vld [vmem:[#allocation10 + $0x78] sm:$0xff]  ;;  %v345_v36 = vld [vmem:[#allocation8 + $0x60] sm:$0xff]  ;;  %v371_v39 = vld [vmem:[#allocation8 + $0x130] sm:$0xff] }
  0x67   : > { %510 = vmatpush.msra.mxu3 %v479_v16  ;;  %v352_v34 = vld [vmem:[#allocation8 + $0x98] sm:$0xff]  ;;  %v461_v37 = vld [vmem:[#allocation10 + $0x60] sm:$0xff]  ;;  %430 = vmatpush.msra.mxu2 %v377_v31  ;;  %v342_v40 = vld [vmem:[#allocation8 + $0x48] sm:$0xff] }
  0x68   : > { %395 = vmatpush.msra.mxu0 %v360_v18  ;;  %414 = vmatpush.msra.mxu1 %v364_v20  ;;  %v349_v38 = vld [vmem:[#allocation8 + $0x80] sm:$0xff]  ;;  %v458_v41 = vld [vmem:[#allocation10 + $0x48] sm:$0xff]  ;;  %v368_v43 = vld [vmem:[#allocation8 + $0x118] sm:$0xff] }
  0x69   : > { %511 = vmatpush.msra.mxu3 %v476_v19  ;;  %431 = vmatpush.msra.mxu2 %v374_v35  ;;  %v346_v42 = vld [vmem:[#allocation8 + $0x68] sm:$0xff]  ;;  %v339_v44 = vld [vmem:[#allocation8 + $0x30] sm:$0xff]  ;;  %v365_v47 = vld [vmem:[#allocation8 + $0x100] sm:$0xff] }
  0x6a   : > { %396 = vmatpush.msra.mxu0 %v357_v21  ;;  %415 = vmatpush.msra.mxu1 %v361_v23  ;;  %v455_v45 = vld [vmem:[#allocation10 + $0x30] sm:$0xff]  ;;  %v336_v48 = vld [vmem:[#allocation8 + $0x18] sm:$0xff]  ;;  %v362_v51 = vld [vmem:[#allocation8 + $0xe8] sm:$0xff] }
  0x6b   : > { %512 = vmatpush.msra.mxu3 %v473_v22  ;;  %432 = vmatpush.msra.mxu2 %v371_v39  ;;  %v343_v46 = vld [vmem:[#allocation8 + $0x50] sm:$0xff]  ;;  %v452_v49 = vld [vmem:[#allocation10 + $0x18] sm:$0xff]  ;;  %v333_v52 = vld [vmem:[#allocation8] sm:$0xff] }
  0x6c   : > { %397 = vmatpush.msra.mxu0 %v354_v24  ;;  %416 = vmatpush.msra.mxu1 %v358_v26  ;;  %v340_v50 = vld [vmem:[#allocation8 + $0x38] sm:$0xff]  ;;  %v449_v53 = vld [vmem:[#allocation10] sm:$0xff]  ;;  %v495_v54 = vld [vmem:[#allocation10 + $0x170] sm:$0xff] }
  0x6d   : > { %513 = vmatpush.msra.mxu3 %v470_v25  ;;  %433 = vmatpush.msra.mxu2 %v368_v43  ;;  %v1290_v55 = vld [vmem:[#allocation2] sm:$0x1]  ;;  %v337_v56 = vld [vmem:[#allocation8 + $0x20] sm:$0xff]  ;;  %v1293_v57 = vld [vmem:[%s1266_s9] sm:$0x1] }
  0x6e   : > { %398 = vmatpush.msra.mxu0 %v351_v27  ;;  %417 = vmatpush.msra.mxu1 %v355_v30  ;;  %v492_v58 = vld [vmem:[#allocation10 + $0x158] sm:$0xff]  ;;  %v359_v59 = vld [vmem:[#allocation8 + $0xd0] sm:$0xff]  ;;  %v334_v60 = vld [vmem:[#allocation8 + $0x8] sm:$0xff] }
  0x6f   : > { %514 = vmatpush.msra.mxu3 %v467_v28  ;;  %434 = vmatpush.msra.mxu2 %v365_v47  ;;  %v489_v61 = vld [vmem:[#allocation10 + $0x140] sm:$0xff]  ;;  %v496_v62 = vld [vmem:[#allocation10 + $0x178] sm:$0xff]  ;;  %v486_v0 = vld [vmem:[#allocation10 + $0x128] sm:$0xff] }
  0x70   : > { %399 = vmatpush.msra.mxu0 %v348_v32  ;;  %418 = vmatpush.msra.mxu1 %v352_v34  ;;  %v356_v63 = vld [vmem:[#allocation8 + $0xb8] sm:$0xff]  ;;  %v493_v1 = vld [vmem:[#allocation10 + $0x160] sm:$0xff]  ;;  %v483_v3 = vld [vmem:[#allocation10 + $0x110] sm:$0xff] }
  0x71   : > { %515 = vmatpush.msra.mxu3 %v464_v33  ;;  %435 = vmatpush.msra.mxu2 %v362_v51  ;;  %v353_v2 = vld [vmem:[#allocation8 + $0xa0] sm:$0xff]  ;;  %v490_v4 = vld [vmem:[#allocation10 + $0x148] sm:$0xff]  ;;  %v480_v6 = vld [vmem:[#allocation10 + $0xf8] sm:$0xff] }
  0x72   : > { %400 = vmatpush.msra.mxu0 %v345_v36  ;;  %419 = vmatpush.msra.mxu1 %v349_v38  ;;  %v350_v5 = vld [vmem:[#allocation8 + $0x88] sm:$0xff]  ;;  %v487_v7 = vld [vmem:[#allocation10 + $0x130] sm:$0xff]  ;;  %v477_v9 = vld [vmem:[#allocation10 + $0xe0] sm:$0xff] }
  0x73   : > { %516 = vmatpush.msra.mxu3 %v461_v37  ;;  %436 = vmatpush.msra.mxu2 %v359_v59  ;;  %v347_v8 = vld [vmem:[#allocation8 + $0x70] sm:$0xff]  ;;  %v484_v10 = vld [vmem:[#allocation10 + $0x118] sm:$0xff]  ;;  %v474_v12 = vld [vmem:[#allocation10 + $0xc8] sm:$0xff] }
  0x74   : > { %401 = vmatpush.msra.mxu0 %v342_v40  ;;  %420 = vmatpush.msra.mxu1 %v346_v42  ;;  %v344_v11 = vld [vmem:[#allocation8 + $0x58] sm:$0xff]  ;;  %v481_v13 = vld [vmem:[#allocation10 + $0x100] sm:$0xff]  ;;  %v471_v15 = vld [vmem:[#allocation10 + $0xb0] sm:$0xff] }
  0x75   : > { %517 = vmatpush.msra.mxu3 %v458_v41  ;;  %437 = vmatpush.msra.mxu2 %v356_v63  ;;  %v341_v14 = vld [vmem:[#allocation8 + $0x40] sm:$0xff]  ;;  %v478_v16 = vld [vmem:[#allocation10 + $0xe8] sm:$0xff]  ;;  %v468_v18 = vld [vmem:[#allocation10 + $0x98] sm:$0xff] }
  0x76   : > { %402 = vmatpush.msra.mxu0 %v339_v44  ;;  %421 = vmatpush.msra.mxu1 %v343_v46  ;;  %v338_v17 = vld [vmem:[#allocation8 + $0x28] sm:$0xff]  ;;  %v475_v19 = vld [vmem:[#allocation10 + $0xd0] sm:$0xff]  ;;  %v465_v21 = vld [vmem:[#allocation10 + $0x80] sm:$0xff] }
  0x77   : > { %518 = vmatpush.msra.mxu3 %v455_v45  ;;  %438 = vmatpush.msra.mxu2 %v353_v2  ;;  %v335_v20 = vld [vmem:[#allocation8 + $0x10] sm:$0xff]  ;;  %v472_v22 = vld [vmem:[#allocation10 + $0xb8] sm:$0xff]  ;;  %v462_v23 = vld [vmem:[#allocation10 + $0x68] sm:$0xff] }
  0x78   : > { %403 = vmatpush.msra.mxu0 %v336_v48  ;;  %422 = vmatpush.msra.mxu1 %v340_v50  ;;  %v469_v24 = vld [vmem:[#allocation10 + $0xa0] sm:$0xff]  ;;  %v459_v25 = vld [vmem:[#allocation10 + $0x50] sm:$0xff]  ;;  %v466_v26 = vld [vmem:[#allocation10 + $0x88] sm:$0xff] }
  0x79   : > { %519 = vmatpush.msra.mxu3 %v452_v49  ;;  %439 = vmatpush.msra.mxu2 %v350_v5  ;;  %v456_v27 = vld [vmem:[#allocation10 + $0x38] sm:$0xff]  ;;  %v463_v28 = vld [vmem:[#allocation10 + $0x70] sm:$0xff]  ;;  %v453_v29 = vld [vmem:[#allocation10 + $0x20] sm:$0xff] }
  0x7a   : > { %404 = vmatpush.msra.mxu0 %v333_v52  ;;  %423 = vmatpush.msra.mxu1 %v337_v56  ;;  %v460_v30 = vld [vmem:[#allocation10 + $0x58] sm:$0xff]  ;;  %v450_v31 = vld [vmem:[#allocation10 + $0x8] sm:$0xff]  ;;  %v457_v32 = vld [vmem:[#allocation10 + $0x40] sm:$0xff] }
  0x7b   : > { %520 = vmatpush.msra.mxu3 %v449_v53  ;;  %405 = vmatmul.f32.vlgmr.msra.gmra.mxu0 %v1293_v57  ;;  %v454_v33 = vld [vmem:[#allocation10 + $0x28] sm:$0xff]  ;;  %v451_v34 = vld [vmem:[#allocation10 + $0x10] sm:$0xff]  ;;  %v497_v36 = vld [vmem:[#allocation11] sm:$0x7] }
  0x7c   : > { %525 = vmatpush.msrb.mxu0 %v495_v54  ;;  %521 = vmatmul.f32.vlgmr.msra.gmra.mxu3 %v1290_v55  ;;  %v381_v35 = vld [vmem:[%s1354_s5] sm:$0x7]  ;;  %v499_v39 = vperm.slane %v497_v36, 0  ;;  %v500_v50 = vperm.slane %v497_v36, 1  ;;  %v501_v63 = vperm.slane %v497_v36, 2 }
  0x7d   : > { %424 = vmatpush.msra.mxu1 %v334_v60  ;;  %440 = vmatpush.msra.mxu2 %v347_v8  ;;  %v383_v37 = vperm.slane %v381_v35, 0  ;;  %v384_v47 = vperm.slane %v381_v35, 1 }
  0x7e   : > { %526 = vmatpush.msrb.mxu0 %v492_v58  ;;  %425 = vmatmul.f32.vlgmr.msra.gmra.mxu1 %v1293_v57 }
  0x7f   : > { %545 = vmatpush.msrb.mxu1 %v496_v62  ;;  %441 = vmatpush.msra.mxu2 %v344_v11 }
  0x80   : > { %527 = vmatpush.msrb.mxu0 %v489_v61 }
  0x81   : > { %546 = vmatpush.msrb.mxu1 %v493_v1  ;;  %442 = vmatpush.msra.mxu2 %v341_v14 }
  0x82   : > { %528 = vmatpush.msrb.mxu0 %v486_v0 }
  0x83   : > { %547 = vmatpush.msrb.mxu1 %v490_v4  ;;  %443 = vmatpush.msra.mxu2 %v338_v17 }
  0x84   : > { %529 = vmatpush.msrb.mxu0 %v483_v3 }
  0x85   : > { %548 = vmatpush.msrb.mxu1 %v487_v7  ;;  %444 = vmatpush.msra.mxu2 %v335_v20 }
  0x86   : > { %530 = vmatpush.msrb.mxu0 %v480_v6  ;;  %445 = vmatmul.f32.vlgmr.msra.gmra.mxu2 %v1293_v57  ;;  %v385_v6 = vperm.slane %v381_v35, 2 }
  0x87   : > { %549 = vmatpush.msrb.mxu1 %v484_v10 }
  0x88   : > { %531 = vmatpush.msrb.mxu0 %v477_v9 }
  0x89   : > { %550 = vmatpush.msrb.mxu1 %v481_v13 }
  0x8a   : > { %532 = vmatpush.msrb.mxu0 %v474_v12 }
  0x8b   : > { %551 = vmatpush.msrb.mxu1 %v478_v16 }
  0x8c   : > { %533 = vmatpush.msrb.mxu0 %v471_v15 }
  0x8d   : > { %552 = vmatpush.msrb.mxu1 %v475_v19 }
  0x8e   : > { %534 = vmatpush.msrb.mxu0 %v468_v18 }
  0x8f   : > { %553 = vmatpush.msrb.mxu1 %v472_v22 }
  0x90   : > { %535 = vmatpush.msrb.mxu0 %v465_v21 }
  0x91   : > { %554 = vmatpush.msrb.mxu1 %v469_v24 }
  0x92   : > { %536 = vmatpush.msrb.mxu0 %v462_v23 }
  0x93   : > { %555 = vmatpush.msrb.mxu1 %v466_v26 }
  0x94   : > { %537 = vmatpush.msrb.mxu0 %v459_v25 }
  0x95   : > { %556 = vmatpush.msrb.mxu1 %v463_v28 }
  0x96   : > { %538 = vmatpush.msrb.mxu0 %v456_v27 }
  0x97   : > { %557 = vmatpush.msrb.mxu1 %v460_v30 }
  0x98   : > { %539 = vmatpush.msrb.mxu0 %v453_v29 }
  0x99   : > { %558 = vmatpush.msrb.mxu1 %v457_v32 }
  0x9a   : > { %540 = vmatpush.msrb.mxu0 %v450_v31 }
  0x9b   : > { %541 = vmatmul.f32.vlgmr.msrb.gmra.mxu0 %v1290_v55  ;;  %559 = vmatpush.msrb.mxu1 %v454_v33 }
  0x9d   : > { %560 = vmatpush.msrb.mxu1 %v451_v34 }
  0x9e   : > { %561 = vmatmul.f32.vlgmr.msrb.gmra.mxu1 %v1290_v55 }
  0xf8   : > { %v406_v38 = vpop.f32.mrf.mxu0 }
  0xf9   : > { %v407_v40 = vadd.f32 %v406_v38, %v383_v37 }
  0xfb   : > { %v426_v48 = vpop.f32.mrf.mxu1 }
  0xfc   : > { %v427_v52 = vadd.f32 %v426_v48, %v384_v47 }
  0xff   : > { %v522_v41 = vpop.f32.mrf.mxu3 }
 0x100   : > { %v523_v42 = vadd.f32 %v522_v41, %v499_v39 }
 0x102   : > { %v565_v43 = vadd.f32 %v523_v42, %v407_v40 }
 0x104   : > { %v729_v44 = vmul.f32 -1.442695, %v565_v43 }
 0x106   : > { %841 = vpow2.f32 %v729_v44 }
 0x109   : > { %v446_v8 = vpop.f32.mrf.mxu2 }
 0x10a   : > { %v447_v10 = vadd.f32 %v446_v8, %v385_v6 }
 0x10c   : > { %v842_v45 = vpop.eup %841 }
 0x10d   : > { %v569_v46 = vadd.f32 1.0, %v842_v45 }
 0x10f   : > { %843 = vrcp.f32 %v569_v46  ;;  %vm575_vm0 = vweird.f32 %v569_v46  ;;  %v581_v60 = vand.u32 2147483648, %v569_v46  ;;  %v579_v62 = vand.u32 2147483647, %v569_v46 }
 0x111   : > { %v582_v2 = vor.u32 1.1754944e-38, %v581_v60  ;;  %vm580_vm3 = vcmp.eq.f32.partialorder %v579_v62, 8.507059e+37 }
 0x115   : > { %v844_v49 = vpop.eup %843 }
 0x116   : > { %v571_v51 = vmul.f32 %v844_v49, %v569_v46  ;;  %vm576_vm1 = vweird.f32 %v844_v49 }
 0x117   : > { %vm577_vm2 = vmor %vm575_vm0, %vm576_vm1 }
 0x118   : > { %v542_v53 = vpop.f32.mrf.mxu0  ;;  %v572_v56 = vsub.f32 1.0, %v571_v51 }
 0x119   : > { %v543_v54 = vadd.f32 %v542_v53, %v500_v50 }
 0x11a   : > { %v573_v59 = vmul.f32 %v844_v49, %v572_v56 }
 0x11b   : > { %v585_v57 = vadd.f32 %v543_v54, %v427_v52  ;;  %v562_v1 = vpop.f32.mrf.mxu1 }
 0x11c   : > { %v574_v61 = vadd.f32 %v844_v49, %v573_v59  ;;  %v563_v5 = vadd.f32 %v562_v1, %v501_v63 }
 0x11d   : > { %v730_v58 = vmul.f32 -1.442695, %v585_v57 }
 0x11e   : > { %v578_v4 = vsel %vm577_vm2, %v844_v49, %v574_v61 }
 0x11f   : > { %845 = vpow2.f32 %v730_v58  ;;  %v583_v7 = vsel %vm580_vm3, %v582_v2, %v578_v4 }
 0x120   : > { %v605_v9 = vmul.f32 %v583_v7, %v563_v5 }
 0x122   : > { %v606_v13 = vadd.f32 %v605_v9, %v447_v10 }
 0x125   : > { %v846_v0 = vpop.eup %845 }
 0x126   : > { %v589_v3 = vadd.f32 1.0, %v846_v0 }
 0x128   : > { %847 = vrcp.f32 %v589_v3  ;;  %v601_v15 = vand.u32 2147483648, %v589_v3  ;;  %v599_v17 = vand.u32 2147483647, %v589_v3  ;;  %vm595_vm5 = vweird.f32 %v589_v3 }
 0x129   : > { %849 = vtanh.f32 %v606_v13 }
 0x12a   : > { %v602_v19 = vor.u32 1.1754944e-38, %v601_v15  ;;  %vm600_vm7 = vcmp.eq.f32.partialorder %v599_v17, 8.507059e+37 }
 0x12e   : > { %v848_v11 = vpop.eup %847 }
 0x12f   : > { %v591_v12 = vmul.f32 %v848_v11, %v589_v3  ;;  %vm596_vm4 = vweird.f32 %v848_v11  ;;  %v850_v23 = vpop.eup %849 }
 0x130   : > { %vm597_vm6 = vmor %vm595_vm5, %vm596_vm4 }
 0x131   : > { %v592_v14 = vsub.f32 1.0, %v591_v12 }
 0x133   : > { %v593_v16 = vmul.f32 %v848_v11, %v592_v14 }
 0x135   : > { %v594_v18 = vadd.f32 %v848_v11, %v593_v16 }
 0x137   : > { %v598_v20 = vsel %vm597_vm6, %v848_v11, %v594_v18 }
 0x138   : > { %v603_v21 = vsel %vm600_vm7, %v602_v19, %v598_v20 }
 0x139   : > { %v608_v22 = vsub.f32 1.0, %v603_v21  ;;  %v610_v25 = vmul.f32 %v603_v21, %v1290_v55 }
 0x13b   : > { %v609_v24 = vmul.f32 %v850_v23, %v608_v22 }
 0x13d   : > { %v611_v26 = vadd.f32 %v610_v25, %v609_v24 }
 0x13f   : > { %612 = vst [vmem:[#allocation2] sm:$0x1] %v611_v26 }
 0x140   : > { %613 = vst [vmem:[%s1283_s6] sm:$0x1] %v611_v26 }
 0x141   : > { %1010 = shalt.err (!%p1007_p2)
}
 0x142   : > { %749 = dma.vmem_to_hbm [thread:$0]  (%p1179_p5), %s626_s12, 16, %s628_s21, %s615_s26  }
 0x143 PF: > { %p778_p4 = scmp.ge.s32.totalorder %s1083_s10, 2  ;;  %s639_s4 = sand.u32 1, %s1059_s28  }
 0x144   : > { %s640_s6 = scalar_lea.sflag [#allocation7], %s639_s4 }
 0x145   : > { %p768_p6 = pnand %p778_p4, %p1184_p7 }
 0x147   : > { %p769_p8 = pneg %p768_p6 }
 0x149   : > { %1054 = dma.done.wait (%p769_p8), %s640_s6, 16  }
 0x14a   : > { %1056 = vsyncadd (%p769_p8), %s640_s6, 4294967280  ;;  %s1374_s18 = sld [smem:[#allocation22_spill]]  ;;  %p30_p5 = scmp.ge.s32.totalorder %s1218_s17, 10  }
 0x14b   : > { %s1375_s25 = sld [smem:[#allocation21_spill]]  ;;  %s1377_s28 = smov %s1063_s29 }
 0x14c   : > { %s1376_s9 = sld [smem:[#allocation23_spill]]  ;;  %s1378_s29 = smov %s1067_s30 }
 0x14d   : > { %s1380_s8 = smov %s1075_s0  ;;  %s1382_s10 = smov %s1218_s17 }
 0x14e   :  { %32 = sbr.rel (!%p30_p5) target bundleno = 17 (0x11), region = 105 }
 0x150   : > { %s1379_s30 = smov %s1374_s18 }
 0x151   : > { %s1381_s0 = smov %s1375_s25 }
 0x153   :  { %645 = vsyncpa [#allocation6], 1 }
 0x154   :  { %647 = vsyncpa [#allocation6 + $0x1], 1 }
 0x155   :  { %648 = vsyncpa [#allocation9], 1 }
 0x156   :  { %649 = vsyncpa [#allocation12], 1 }
 0x157   :  { %650 = vsyncpa [#allocation7], 1 }
 0x158   :  { %652 = vsyncpa [#allocation7 + $0x1], 1 }

</bundles_post_ra>
